<compile_context>
chip_gen: v6e
topology: v6e:2x2x1
jax: 0.10.0
libtpu: 0.0.40
codegen_flags: <defaults>
</compile_context>

<pallas_src>
import functools
import math

import jax
import jax.numpy as jnp
from jax import lax
from jax.experimental import pallas as pl
from jax.experimental.pallas import tpu as pltpu


def _round_up(x, m):
    return ((x + m - 1) // m) * m


# ----------------------------------------------------------------------------
# Fast path: stride == 1, 2*padding <= K-1  (row-tiled, lane-dense kernel)
# ----------------------------------------------------------------------------
def _sepconv_rows_kernel(x_hbm, wd_ref, wp_ref, o_ref, xs_ref, dma_sem, *,
                         kernel_size, padding, width, rows_out, rows_in,
                         margin, out_lanes, specials, has_middle):
    k, p, w = kernel_size, padding, width
    b = pl.program_id(0)
    t = pl.program_id(1)
    cin = xs_ref.shape[0]
    cout = o_ref.shape[1]
    lpad = xs_ref.shape[1]

    def dma_rows(src_lane, n_lanes, dst_lane):
        cp = pltpu.make_async_copy(
            x_hbm.at[b, :, pl.ds(src_lane, n_lanes)],
            xs_ref.at[:, pl.ds(dst_lane, n_lanes)],
            dma_sem)
        cp.start()
        cp.wait()

    # -- Fetch the halo'd row window; zero padding realized in VMEM, not HBM. --
    if has_middle:
        def _middle():
            start = pl.multiple_of((t * rows_out - p) * w, w)
            dma_rows(start, rows_in * w, margin)
        cond = None
        for (tt, _s, _n, _d) in specials:
            c = t != tt
            cond = c if cond is None else jnp.logical_and(cond, c)
        if cond is None:
            _middle()
        else:
            pl.when(cond)(_middle)

    # Edge tiles: copy only the valid rows, then rebuild the scratch with the
    # zero rows (top/bottom padding, partial last tile) in place.  All sizes
    # and offsets are static Python ints -> aligned DMA, unambiguous shifts.
    for (tt, src0, nvalid, dst) in specials:
        def _special(src0=src0, nvalid=nvalid, dst=dst):
            dma_rows(src0 * w, nvalid * w, margin)
            data = xs_ref[:, pl.ds(margin, nvalid * w)]
            lead = margin + dst * w
            pieces = []
            if lead:
                pieces.append(jnp.zeros((cin, lead), xs_ref.dtype))
            pieces.append(data)
            trail = lpad - lead - nvalid * w
            if trail:
                pieces.append(jnp.zeros((cin, trail), xs_ref.dtype))
            xs_ref[...] = (jnp.concatenate(pieces, axis=1)
                           if len(pieces) > 1 else pieces[0])
        pl.when(t == tt)(_special)

    # -- Depthwise: K^2 lane-offset reads of the scratch + masked VPU FMA. --
    col = lax.broadcasted_iota(jnp.int32, (1, out_lanes), 1) % w
    acc = jnp.zeros((cin, out_lanes), jnp.float32)
    for kx in range(k):
        dx = kx - p
        if dx < 0:
            mask = col >= -dx
        elif dx > 0:
            mask = col < (w - dx)
        else:
            mask = None
        for ky in range(k):
            off = margin + ky * w + dx            # static, >= 0 by construction
            sh = xs_ref[:, pl.ds(off, out_lanes)]
            if mask is not None:
                sh = jnp.where(mask, sh, 0)
            wvec = wd_ref[:, pl.ds(ky * k + kx, 1)]      # (Cin, 1), f32
            acc = acc + sh * wvec

    # -- Pointwise 1x1. Tiny channels: unrolled VPU sum; else MXU matmul. --
    if cin <= 8:
        out = jnp.zeros((cout, out_lanes), jnp.float32)
        for c in range(cin):
            out = out + wp_ref[:, pl.ds(c, 1)] * acc[c:c + 1, :]
    else:
        out = jnp.dot(wp_ref[...], acc, preferred_element_type=jnp.float32)

    o_ref[0] = out.astype(o_ref.dtype)


def _choose_tile_rows(ho, w, cin, cout, k, itemsize, tile_rows):
    """Pick output rows per tile: lane-dense (TH*W % 128 == 0) and VMEM-bounded."""
    lane_mult = max(1, 128 // math.gcd(w, 128))
    if tile_rows is None:
        th = max(1, 4096 // w)                      # ~4K output lanes per tile
        budget = 12 * 1024 * 1024                   # conservative: fits v5e/v6e/v7x

        def footprint(rows):
            lanes = _round_up(128 + (rows + k - 1) * w + k, 128)
            return (cin * lanes * itemsize          # input scratch
                    + cin * rows * w * 4            # f32 depthwise accumulator
                    + 2 * cout * rows * w * 4)      # double-buffered output block

        while th > lane_mult and footprint(th) > budget:
            th -= lane_mult
    else:
        th = int(tile_rows)
    if th >= ho:
        return ho, 1
    th = max(lane_mult, (th // lane_mult) * lane_mult)
    if th >= ho:
        return ho, 1
    return th, -(-ho // th)


def _forward_fast(x, w_dw, w_pw, *, k, padding, tile_rows):
    n, cin, h, w = x.shape
    cout = w_pw.shape[0]
    ho = h + 2 * padding - k + 1
    wo = w + 2 * padding - k + 1

    th, n_t = _choose_tile_rows(ho, w, cin, cout, k, x.dtype.itemsize, tile_rows)
    th_in = th + k - 1
    margin = 128 if padding > 0 else 0              # keeps all tap offsets >= 0
    lpad = _round_up(margin + th_in * w + max(k - 1 - padding, 0), 128)
    out_lanes = th * w

    # Static per-tile DMA metadata (which tiles touch the zero-padded border).
    specials = []
    for tt in range(n_t):
        g0 = tt * th - padding
        lo, hi = max(g0, 0), min(g0 + th_in, h)
        if g0 < 0 or g0 + th_in > h:
            specials.append((tt, lo, hi - lo, lo - g0))
    specials = tuple(specials)
    has_middle = len(specials) < n_t

    # Glue: free reshapes only; weights cast to f32 once here (resident blocks).
    x_flat = x.reshape(n, cin, h * w)
    wd = w_dw.reshape(cin, k * k).astype(jnp.float32)     # (Cin, K*K)
    wp = w_pw.reshape(cout, cin).astype(jnp.float32)      # (Cout, Cin)

    kernel = functools.partial(
        _sepconv_rows_kernel, kernel_size=k, padding=padding, width=w,
        rows_out=th, rows_in=th_in, margin=margin, out_lanes=out_lanes,
        specials=specials, has_middle=has_middle)

    out = pl.pallas_call(
        kernel,
        out_shape=jax.ShapeDtypeStruct((n, cout, n_t * th * w), x.dtype),
        grid_spec=pltpu.PrefetchScalarGridSpec(
            num_scalar_prefetch=0,
            grid=(n, n_t),
            in_specs=[
                pl.BlockSpec(memory_space=pl.ANY),                 # raw HBM input
                pl.BlockSpec((cin, k * k), lambda b, t: (0, 0)),   # depthwise w
                pl.BlockSpec((cout, cin), lambda b, t: (0, 0)),    # pointwise w
            ],
            out_specs=pl.BlockSpec((1, cout, out_lanes), lambda b, t: (b, 0, t)),
            scratch_shapes=[pltpu.VMEM((cin, lpad), x.dtype),
                            pltpu.SemaphoreType.DMA],
        ),
        compiler_params=pltpu.CompilerParams(
            dimension_semantics=("parallel", "parallel"),
            vmem_limit_bytes=32 * 1024 * 1024),
    )(x_flat, wd, wp)

    out = out.reshape(n, cout, n_t * th, w)
    return out[:, :, :ho, :wo]                      # no-op when Ho%TH==0, Wo==W


# ----------------------------------------------------------------------------
# Fallback path (stride > 1 or padding > (K-1)/2): simple, proven kernel.
# TODO(synk): optimize the strided / large-padding path like the stride-1 path.
# ----------------------------------------------------------------------------
def _sepconv_fallback_kernel(x_ref, wd_ref, wp_ref, o_ref, *, kernel_size,
                             stride, h_out, w_out):
    x = x_ref[0]                                    # (Hp, Wp, Cin)
    wd = wd_ref[...].astype(jnp.float32)
    cin = x.shape[-1]
    acc = jnp.zeros((h_out, w_out, cin), jnp.float32)
    for ky in range(kernel_size):
        for kx in range(kernel_size):
            patch = x[ky:ky + (h_out - 1) * stride + 1:stride,
                      kx:kx + (w_out - 1) * stride + 1:stride, :]
            acc = acc + patch.astype(jnp.float32) * wd[ky, kx]
    dw = acc.reshape(h_out * w_out, cin)
    out = jnp.dot(dw, wp_ref[...].astype(jnp.float32),
                  preferred_element_type=jnp.float32)
    o_ref[...] = out.reshape(1, h_out, w_out, -1).astype(o_ref.dtype)


def _forward_fallback(x_nchw, w_dw, w_pw, *, stride, padding):
    n, cin, h, w = x_nchw.shape
    k = w_dw.shape[-1]
    cout = w_pw.shape[0]
    h_out = (h + 2 * padding - k) // stride + 1
    w_out = (w + 2 * padding - k) // stride + 1

    x = jnp.transpose(x_nchw, (0, 2, 3, 1))
    x = jnp.pad(x, ((0, 0), (padding, padding), (padding, padding), (0, 0)))
    hp, wp_ = h + 2 * padding, w + 2 * padding
    wd = jnp.transpose(w_dw[:, 0, :, :], (1, 2, 0))          # (K, K, Cin)
    wpt = jnp.transpose(w_pw[:, :, 0, 0], (1, 0))            # (Cin, Cout)

    kernel = functools.partial(_sepconv_fallback_kernel, kernel_size=k,
                               stride=stride, h_out=h_out, w_out=w_out)
    out_nhwc = pl.pallas_call(
        kernel,
        out_shape=jax.ShapeDtypeStruct((n, h_out, w_out, cout), x.dtype),
        grid_spec=pltpu.PrefetchScalarGridSpec(
            num_scalar_prefetch=0,
            grid=(n,),
            in_specs=[
                pl.BlockSpec((1, hp, wp_, cin), lambda b: (b, 0, 0, 0)),
                pl.BlockSpec((k, k, cin), lambda b: (0, 0, 0)),
                pl.BlockSpec((cin, cout), lambda b: (0, 0)),
            ],
            out_specs=pl.BlockSpec((1, h_out, w_out, cout),
                                   lambda b: (b, 0, 0, 0)),
        ),
        compiler_params=pltpu.CompilerParams(
            dimension_semantics=("parallel",)),
    )(x, wd, wpt)
    return jnp.transpose(out_nhwc, (0, 3, 1, 2))


# ----------------------------------------------------------------------------
# Public entry point (matches the PyTorch module forward).
# ----------------------------------------------------------------------------
def conv2d_separable(x_nchw, w_dw, w_pw, *, stride=1, padding=0,
                     tile_rows=None):
    """x: (N, Cin, H, W); w_dw: (Cin, 1, K, K); w_pw: (Cout, Cin, 1, 1)."""
    n, cin, h, w = x_nchw.shape
    k = w_dw.shape[-1]
    ho = (h + 2 * padding - k) // stride + 1
    wo = (w + 2 * padding - k) // stride + 1
    if stride == 1 and 2 * padding <= k - 1 and ho >= 1 and wo >= 1:
        return _forward_fast(x_nchw, w_dw, w_pw, k=k, padding=padding,
                             tile_rows=tile_rows)
    return _forward_fallback(x_nchw, w_dw, w_pw, stride=stride, padding=padding)


def _reference(x_nchw, w_dw, w_pw, *, stride, padding):
    cin = x_nchw.shape[1]
    dw = lax.conv_general_dilated(
        x_nchw, w_dw, window_strides=(stride, stride),
        padding=((padding, padding), (padding, padding)),
        feature_group_count=cin,
        dimension_numbers=("NCHW", "OIHW", "NCHW"))
    return lax.conv_general_dilated(
        dw, w_pw, window_strides=(1, 1), padding="VALID",
        dimension_numbers=("NCHW", "OIHW", "NCHW"))


if __name__ == "__main__":
    # Shapes consistent with the module: Conv2dSeparable(4, 8, 3, ...)
    N, CIN, COUT, K = 2, 4, 8, 3
    key = jax.random.PRNGKey(0)
    kx1, kx2, kd, kp = jax.random.split(key, 4)
    x16 = jax.random.normal(kx1, (N, CIN, 16, 16), dtype=jnp.float32)
    x32 = jax.random.normal(kx2, (N, CIN, 32, 16), dtype=jnp.float32)
    w_dw = jax.random.normal(kd, (CIN, 1, K, K), dtype=jnp.float32) * 0.1
    w_pw = jax.random.normal(kp, (COUT, CIN, 1, 1), dtype=jnp.float32) * 0.1

    cases = [
        ("same_conv_single_tile", x16, dict(stride=1, padding=1)),
        ("same_conv_row_tiled",   x32, dict(stride=1, padding=1, tile_rows=8)),
        ("valid_conv",            x16, dict(stride=1, padding=0)),
        ("strided_fallback",      x16, dict(stride=2, padding=1)),
    ]
    for name, xin, kw in cases:
        out = conv2d_separable(xin, w_dw, w_pw, **kw)
        out = jax.block_until_ready(out)
        ref = _reference(xin, w_dw, w_pw, stride=kw.get("stride", 1),
                         padding=kw.get("padding", 0))
        assert out.shape == ref.shape, (name, out.shape, ref.shape)
        assert jnp.allclose(out, ref, atol=2e-5, rtol=2e-5), f"mismatch: {name}"

    print("KERNEL_OK")
</pallas_src>

<mosaic_0001>
module attributes {stable_mosaic.version = 11 : i64} {
  func.func @_sepconv_rows_kernel(%arg0: i32, %arg1: i32, %arg2: memref<2x4x256xf32, #tpu.memory_space<any>>, %arg3: memref<4x9xf32, #tpu.memory_space<vmem>>, %arg4: memref<8x4xf32, #tpu.memory_space<vmem>>, %arg5: memref<1x8x256xf32, #tpu.memory_space<vmem>>, %arg6: memref<4x512xf32, #tpu.memory_space<vmem>>, %arg7: memref<!tpu.dma_semaphore, #tpu.memory_space<semaphore_mem>>) attributes {dimension_semantics = [#tpu.dimension_semantics<parallel>, #tpu.dimension_semantics<parallel>], iteration_bounds = array<i64: 2, 1>, scalar_prefetch = 0 : i64, scratch_operands = 2 : i64, tpu.core_type = #tpu.core_type<tc>, window_params = [{}, {pipeline_mode = #tpu.pipeline_mode<synchronous>, transform_indices = @transform_1, window_bounds = array<i64: 4, 9>}, {pipeline_mode = #tpu.pipeline_mode<synchronous>, transform_indices = @transform_2, window_bounds = array<i64: 8, 4>}, {transform_indices = @transform_3, window_bounds = array<i64: 1, 8, 256>}]} {
    %c0_i32 = arith.constant 0 : i32
    %0 = arith.cmpi eq, %arg1, %c0_i32 : i32
    %1 = arith.extui %0 : i1 to i32
    %c0_i32_0 = arith.constant 0 : i32
    %2 = arith.cmpi ne, %1, %c0_i32_0 : i32
    scf.if %2 {
      %c0_i32_42 = arith.constant 0 : i32
      %c0_i32_43 = arith.constant 0 : i32
      %128 = tpu.memref_slice %arg2[%arg0, %c0_i32_42, %c0_i32_43] : memref<2x4x256xf32, #tpu.memory_space<any>> -> memref<1x4x256xf32, #tpu.memory_space<any>>
      %129 = tpu.memref_squeeze %128 : memref<1x4x256xf32, #tpu.memory_space<any>> -> memref<4x256xf32, #tpu.memory_space<any>>
      %c0_i32_44 = arith.constant 0 : i32
      %c128_i32 = arith.constant 128 : i32
      %130 = tpu.memref_slice %arg6[%c0_i32_44, %c128_i32] : memref<4x512xf32, #tpu.memory_space<vmem>> -> memref<4x256xf32, #tpu.memory_space<vmem>>
      tpu.enqueue_dma source(%129 : memref<4x256xf32, #tpu.memory_space<any>>) target(%130 : memref<4x256xf32, #tpu.memory_space<vmem>>) target_semaphore(%arg7 : memref<!tpu.dma_semaphore, #tpu.memory_space<semaphore_mem>>)
      %c0_i32_45 = arith.constant 0 : i32
      %c0_i32_46 = arith.constant 0 : i32
      %131 = tpu.memref_slice %arg2[%arg0, %c0_i32_45, %c0_i32_46] : memref<2x4x256xf32, #tpu.memory_space<any>> -> memref<1x4x256xf32, #tpu.memory_space<any>>
      %132 = tpu.memref_squeeze %131 : memref<1x4x256xf32, #tpu.memory_space<any>> -> memref<4x256xf32, #tpu.memory_space<any>>
      %c0_i32_47 = arith.constant 0 : i32
      %c128_i32_48 = arith.constant 128 : i32
      %133 = tpu.memref_slice %arg6[%c0_i32_47, %c128_i32_48] : memref<4x512xf32, #tpu.memory_space<vmem>> -> memref<4x256xf32, #tpu.memory_space<vmem>>
      tpu.wait_dma2 semaphore(%arg7 : memref<!tpu.dma_semaphore, #tpu.memory_space<semaphore_mem>>) src(%132 : memref<4x256xf32, #tpu.memory_space<any>>) dst(%133 : memref<4x256xf32, #tpu.memory_space<vmem>>)
      %c0_49 = arith.constant 0 : index
      %c128_50 = arith.constant 128 : index
      %134 = vector.load %arg6[%c0_49, %c128_50] : memref<4x512xf32, #tpu.memory_space<vmem>>, vector<4x256xf32>
      %cst_51 = arith.constant 0.000000e+00 : f32
      %135 = vector.broadcast %cst_51 : f32 to vector<4x144xf32>
      %cst_52 = arith.constant 0.000000e+00 : f32
      %136 = vector.broadcast %cst_52 : f32 to vector<4x112xf32>
      %137 = tpu.concatenate %135, %134, %136 in 1 : vector<4x144xf32>, vector<4x256xf32>, vector<4x112xf32> -> vector<4x512xf32>
      %c0_53 = arith.constant 0 : index
      %c0_54 = arith.constant 0 : index
      %138 = vector.load %arg6[%c0_53, %c0_54] : memref<4x512xf32, #tpu.memory_space<vmem>>, vector<4x512xf32>
      tpu.vector_store %arg6[%c0_53, %c0_54], %137 {strides = array<i32>} : memref<4x512xf32, #tpu.memory_space<vmem>>, vector<4x512xf32>,
    } else {
    }
    %3 = tpu.iota {dimensions = array<i32: 1>} : vector<1x256xi32>
    %c16_i32 = arith.constant 16 : i32
    %c0_i32_1 = arith.constant 0 : i32
    %4 = arith.cmpi eq, %c16_i32, %c0_i32_1 : i32
    %c1_i32 = arith.constant 1 : i32
    %5 = arith.select %4, %c1_i32, %c16_i32 : i32
    %6 = vector.broadcast %5 : i32 to vector<1x256xi32>
    %7 = arith.remsi %3, %6 : vector<1x256xi32>
    %c0_i32_2 = arith.constant 0 : i32
    %8 = vector.broadcast %c0_i32_2 : i32 to vector<1x256xi32>
    %9 = arith.cmpi ne, %7, %8 : vector<1x256xi32>
    %c0_i32_3 = arith.constant 0 : i32
    %10 = vector.broadcast %c0_i32_3 : i32 to vector<1x256xi32>
    %11 = arith.cmpi slt, %7, %10 : vector<1x256xi32>
    %c0_i32_4 = arith.constant 0 : i32
    %12 = arith.cmpi slt, %5, %c0_i32_4 : i32
    %13 = vector.broadcast %12 : i1 to vector<1x256xi1>
    %14 = vector.broadcast %13 : vector<1x256xi1> to vector<1x256xi1>
    %15 = arith.xori %11, %14 : vector<1x256xi1>
    %16 = arith.andi %15, %9 : vector<1x256xi1>
    %17 = vector.broadcast %5 : i32 to vector<1x256xi32>
    %18 = arith.addi %7, %17 : vector<1x256xi32>
    %19 = arith.select %16, %18, %7 : vector<1x256xi1>, vector<1x256xi32>
    %cst = arith.constant 0.000000e+00 : f32
    %20 = vector.broadcast %cst : f32 to vector<4x256xf32>
    %c1_i32_5 = arith.constant 1 : i32
    %21 = vector.broadcast %c1_i32_5 : i32 to vector<1x256xi32>
    %22 = arith.cmpi sge, %19, %21 : vector<1x256xi32>
    %c0 = arith.constant 0 : index
    %c127 = arith.constant 127 : index
    %23 = vector.load %arg6[%c0, %c127] : memref<4x512xf32, #tpu.memory_space<vmem>>, vector<4x256xf32>
    %c0_i32_6 = arith.constant 0 : i32
    %24 = arith.sitofp %c0_i32_6 : i32 to f32
    %25 = vector.shape_cast %22 : vector<1x256xi1> to vector<1x256xi1>
    %26 = vector.broadcast %25 : vector<1x256xi1> to vector<4x256xi1>
    %27 = vector.broadcast %24 : f32 to vector<4x256xf32>
    %28 = arith.select %26, %23, %27 : vector<4x256xi1>, vector<4x256xf32>
    %c0_7 = arith.constant 0 : index
    %c0_8 = arith.constant 0 : index
    %29 = vector.load %arg3[%c0_7, %c0_8] : memref<4x9xf32, #tpu.memory_space<vmem>>, vector<4x1xf32>
    %30 = vector.broadcast %29 : vector<4x1xf32> to vector<4x256xf32>
    %31 = arith.mulf %28, %30 : vector<4x256xf32>
    %32 = arith.addf %20, %31 : vector<4x256xf32>
    %c0_9 = arith.constant 0 : index
    %c143 = arith.constant 143 : index
    %33 = vector.load %arg6[%c0_9, %c143] : memref<4x512xf32, #tpu.memory_space<vmem>>, vector<4x256xf32>
    %c0_i32_10 = arith.constant 0 : i32
    %34 = arith.sitofp %c0_i32_10 : i32 to f32
    %35 = vector.shape_cast %22 : vector<1x256xi1> to vector<1x256xi1>
    %36 = vector.broadcast %35 : vector<1x256xi1> to vector<4x256xi1>
    %37 = vector.broadcast %34 : f32 to vector<4x256xf32>
    %38 = arith.select %36, %33, %37 : vector<4x256xi1>, vector<4x256xf32>
    %c0_11 = arith.constant 0 : index
    %c3 = arith.constant 3 : index
    %39 = vector.load %arg3[%c0_11, %c3] : memref<4x9xf32, #tpu.memory_space<vmem>>, vector<4x1xf32>
    %40 = vector.broadcast %39 : vector<4x1xf32> to vector<4x256xf32>
    %41 = arith.mulf %38, %40 : vector<4x256xf32>
    %42 = arith.addf %32, %41 : vector<4x256xf32>
    %c0_12 = arith.constant 0 : index
    %c159 = arith.constant 159 : index
    %43 = vector.load %arg6[%c0_12, %c159] : memref<4x512xf32, #tpu.memory_space<vmem>>, vector<4x256xf32>
    %c0_i32_13 = arith.constant 0 : i32
    %44 = arith.sitofp %c0_i32_13 : i32 to f32
    %45 = vector.shape_cast %22 : vector<1x256xi1> to vector<1x256xi1>
    %46 = vector.broadcast %45 : vector<1x256xi1> to vector<4x256xi1>
    %47 = vector.broadcast %44 : f32 to vector<4x256xf32>
    %48 = arith.select %46, %43, %47 : vector<4x256xi1>, vector<4x256xf32>
    %c0_14 = arith.constant 0 : index
    %c6 = arith.constant 6 : index
    %49 = vector.load %arg3[%c0_14, %c6] : memref<4x9xf32, #tpu.memory_space<vmem>>, vector<4x1xf32>
    %50 = vector.broadcast %49 : vector<4x1xf32> to vector<4x256xf32>
    %51 = arith.mulf %48, %50 : vector<4x256xf32>
    %52 = arith.addf %42, %51 : vector<4x256xf32>
    %c0_15 = arith.constant 0 : index
    %c128 = arith.constant 128 : index
    %53 = vector.load %arg6[%c0_15, %c128] : memref<4x512xf32, #tpu.memory_space<vmem>>, vector<4x256xf32>
    %c0_16 = arith.constant 0 : index
    %c1 = arith.constant 1 : index
    %54 = vector.load %arg3[%c0_16, %c1] : memref<4x9xf32, #tpu.memory_space<vmem>>, vector<4x1xf32>
    %55 = vector.broadcast %54 : vector<4x1xf32> to vector<4x256xf32>
    %56 = arith.mulf %53, %55 : vector<4x256xf32>
    %57 = arith.addf %52, %56 : vector<4x256xf32>
    %c0_17 = arith.constant 0 : index
    %c144 = arith.constant 144 : index
    %58 = vector.load %arg6[%c0_17, %c144] : memref<4x512xf32, #tpu.memory_space<vmem>>, vector<4x256xf32>
    %c0_18 = arith.constant 0 : index
    %c4 = arith.constant 4 : index
    %59 = vector.load %arg3[%c0_18, %c4] : memref<4x9xf32, #tpu.memory_space<vmem>>, vector<4x1xf32>
    %60 = vector.broadcast %59 : vector<4x1xf32> to vector<4x256xf32>
    %61 = arith.mulf %58, %60 : vector<4x256xf32>
    %62 = arith.addf %57, %61 : vector<4x256xf32>
    %c0_19 = arith.constant 0 : index
    %c160 = arith.constant 160 : index
    %63 = vector.load %arg6[%c0_19, %c160] : memref<4x512xf32, #tpu.memory_space<vmem>>, vector<4x256xf32>
    %c0_20 = arith.constant 0 : index
    %c7 = arith.constant 7 : index
    %64 = vector.load %arg3[%c0_20, %c7] : memref<4x9xf32, #tpu.memory_space<vmem>>, vector<4x1xf32>
    %65 = vector.broadcast %64 : vector<4x1xf32> to vector<4x256xf32>
    %66 = arith.mulf %63, %65 : vector<4x256xf32>
    %67 = arith.addf %62, %66 : vector<4x256xf32>
    %c15_i32 = arith.constant 15 : i32
    %68 = vector.broadcast %c15_i32 : i32 to vector<1x256xi32>
    %69 = arith.cmpi slt, %19, %68 : vector<1x256xi32>
    %c0_21 = arith.constant 0 : index
    %c129 = arith.constant 129 : index
    %70 = vector.load %arg6[%c0_21, %c129] : memref<4x512xf32, #tpu.memory_space<vmem>>, vector<4x256xf32>
    %c0_i32_22 = arith.constant 0 : i32
    %71 = arith.sitofp %c0_i32_22 : i32 to f32
    %72 = vector.shape_cast %69 : vector<1x256xi1> to vector<1x256xi1>
    %73 = vector.broadcast %72 : vector<1x256xi1> to vector<4x256xi1>
    %74 = vector.broadcast %71 : f32 to vector<4x256xf32>
    %75 = arith.select %73, %70, %74 : vector<4x256xi1>, vector<4x256xf32>
    %c0_23 = arith.constant 0 : index
    %c2 = arith.constant 2 : index
    %76 = vector.load %arg3[%c0_23, %c2] : memref<4x9xf32, #tpu.memory_space<vmem>>, vector<4x1xf32>
    %77 = vector.broadcast %76 : vector<4x1xf32> to vector<4x256xf32>
    %78 = arith.mulf %75, %77 : vector<4x256xf32>
    %79 = arith.addf %67, %78 : vector<4x256xf32>
    %c0_24 = arith.constant 0 : index
    %c145 = arith.constant 145 : index
    %80 = vector.load %arg6[%c0_24, %c145] : memref<4x512xf32, #tpu.memory_space<vmem>>, vector<4x256xf32>
    %c0_i32_25 = arith.constant 0 : i32
    %81 = arith.sitofp %c0_i32_25 : i32 to f32
    %82 = vector.shape_cast %69 : vector<1x256xi1> to vector<1x256xi1>
    %83 = vector.broadcast %82 : vector<1x256xi1> to vector<4x256xi1>
    %84 = vector.broadcast %81 : f32 to vector<4x256xf32>
    %85 = arith.select %83, %80, %84 : vector<4x256xi1>, vector<4x256xf32>
    %c0_26 = arith.constant 0 : index
    %c5 = arith.constant 5 : index
    %86 = vector.load %arg3[%c0_26, %c5] : memref<4x9xf32, #tpu.memory_space<vmem>>, vector<4x1xf32>
    %87 = vector.broadcast %86 : vector<4x1xf32> to vector<4x256xf32>
    %88 = arith.mulf %85, %87 : vector<4x256xf32>
    %89 = arith.addf %79, %88 : vector<4x256xf32>
    %c0_27 = arith.constant 0 : index
    %c161 = arith.constant 161 : index
    %90 = vector.load %arg6[%c0_27, %c161] : memref<4x512xf32, #tpu.memory_space<vmem>>, vector<4x256xf32>
    %c0_i32_28 = arith.constant 0 : i32
    %91 = arith.sitofp %c0_i32_28 : i32 to f32
    %92 = vector.shape_cast %69 : vector<1x256xi1> to vector<1x256xi1>
    %93 = vector.broadcast %92 : vector<1x256xi1> to vector<4x256xi1>
    %94 = vector.broadcast %91 : f32 to vector<4x256xf32>
    %95 = arith.select %93, %90, %94 : vector<4x256xi1>, vector<4x256xf32>
    %c0_29 = arith.constant 0 : index
    %c8 = arith.constant 8 : index
    %96 = vector.load %arg3[%c0_29, %c8] : memref<4x9xf32, #tpu.memory_space<vmem>>, vector<4x1xf32>
    %97 = vector.broadcast %96 : vector<4x1xf32> to vector<4x256xf32>
    %98 = arith.mulf %95, %97 : vector<4x256xf32>
    %99 = arith.addf %89, %98 : vector<4x256xf32>
    %cst_30 = arith.constant 0.000000e+00 : f32
    %100 = vector.broadcast %cst_30 : f32 to vector<8x256xf32>
    %c0_31 = arith.constant 0 : index
    %c0_32 = arith.constant 0 : index
    %101 = vector.load %arg4[%c0_31, %c0_32] : memref<8x4xf32, #tpu.memory_space<vmem>>, vector<8x1xf32>
    %102 = vector.extract_strided_slice %99 {offsets = [0, 0], sizes = [1, 256], strides = [1, 1]} : vector<4x256xf32> to vector<1x256xf32>
    %103 = vector.broadcast %101 : vector<8x1xf32> to vector<8x256xf32>
    %104 = vector.broadcast %102 : vector<1x256xf32> to vector<8x256xf32>
    %105 = arith.mulf %103, %104 : vector<8x256xf32>
    %106 = arith.addf %100, %105 : vector<8x256xf32>
    %c0_33 = arith.constant 0 : index
    %c1_34 = arith.constant 1 : index
    %107 = vector.load %arg4[%c0_33, %c1_34] : memref<8x4xf32, #tpu.memory_space<vmem>>, vector<8x1xf32>
    %108 = vector.extract_strided_slice %99 {offsets = [1, 0], sizes = [1, 256], strides = [1, 1]} : vector<4x256xf32> to vector<1x256xf32>
    %109 = vector.broadcast %107 : vector<8x1xf32> to vector<8x256xf32>
    %110 = vector.broadcast %108 : vector<1x256xf32> to vector<8x256xf32>
    %111 = arith.mulf %109, %110 : vector<8x256xf32>
    %112 = arith.addf %106, %111 : vector<8x256xf32>
    %c0_35 = arith.constant 0 : index
    %c2_36 = arith.constant 2 : index
    %113 = vector.load %arg4[%c0_35, %c2_36] : memref<8x4xf32, #tpu.memory_space<vmem>>, vector<8x1xf32>
    %114 = vector.extract_strided_slice %99 {offsets = [2, 0], sizes = [1, 256], strides = [1, 1]} : vector<4x256xf32> to vector<1x256xf32>
    %115 = vector.broadcast %113 : vector<8x1xf32> to vector<8x256xf32>
    %116 = vector.broadcast %114 : vector<1x256xf32> to vector<8x256xf32>
    %117 = arith.mulf %115, %116 : vector<8x256xf32>
    %118 = arith.addf %112, %117 : vector<8x256xf32>
    %c0_37 = arith.constant 0 : index
    %c3_38 = arith.constant 3 : index
    %119 = vector.load %arg4[%c0_37, %c3_38] : memref<8x4xf32, #tpu.memory_space<vmem>>, vector<8x1xf32>
    %120 = vector.extract_strided_slice %99 {offsets = [3, 0], sizes = [1, 256], strides = [1, 1]} : vector<4x256xf32> to vector<1x256xf32>
    %121 = vector.broadcast %119 : vector<8x1xf32> to vector<8x256xf32>
    %122 = vector.broadcast %120 : vector<1x256xf32> to vector<8x256xf32>
    %123 = arith.mulf %121, %122 : vector<8x256xf32>
    %124 = arith.addf %118, %123 : vector<8x256xf32>
    %c0_39 = arith.constant 0 : index
    %c0_40 = arith.constant 0 : index
    %c0_41 = arith.constant 0 : index
    %125 = vector.load %arg5[%c0_39, %c0_40, %c0_41] : memref<1x8x256xf32, #tpu.memory_space<vmem>>, vector<1x8x256xf32>
    %126 = vector.shape_cast %125 : vector<1x8x256xf32> to vector<8x256xf32>
    %127 = vector.shape_cast %124 : vector<8x256xf32> to vector<1x8x256xf32>
    tpu.vector_store %arg5[%c0_39, %c0_40, %c0_41], %127 {strides = array<i32>} : memref<1x8x256xf32, #tpu.memory_space<vmem>>, vector<1x8x256xf32>,
    return
  }
  func.func @transform_1(%arg0: i32, %arg1: i32) -> (i32, i32) {
    %c0_i32 = arith.constant 0 : i32
    %c0_i32_0 = arith.constant 0 : i32
    %c0_i32_1 = arith.constant 0 : i32
    return %c0_i32, %c0_i32_0 : i32, i32
  }
  func.func @transform_2(%arg0: i32, %arg1: i32) -> (i32, i32) {
    %c0_i32 = arith.constant 0 : i32
    %c0_i32_0 = arith.constant 0 : i32
    %c0_i32_1 = arith.constant 0 : i32
    return %c0_i32, %c0_i32_0 : i32, i32
  }
  func.func @transform_3(%arg0: i32, %arg1: i32) -> (i32, i32, i32) {
    %c0_i32 = arith.constant 0 : i32
    %c0_i32_0 = arith.constant 0 : i32
    return %arg0, %c0_i32, %arg1 : i32, i32, i32
  }
}

</mosaic_0001>

<bundles_post_ra>
// kernel: tpu_custom_call.1
= control target key start
LH: loop header
LB: loop body
LE: loop exit
PB: predicated region body
PF: predicated region fallthrough
CT: control target
= control target key end

     0   :  { %8 = vsyncpa [#allocation5], 0  ;;  %s1107_s0 = inlined_call_operand.hbm [shape: f32[2,4,256], index: 0, kind: input, shape index: {}]   ;;  %s1108_s1 = inlined_call_operand.vmem [shape: f32[4,9], index: 1, kind: input, shape index: {}]   ;;  %s1109_s2 = inlined_call_operand.vmem [shape: f32[8,4], index: 2, kind: input, shape index: {}]   ;;  %s1110_s3 = inlined_call_operand.hbm [shape: f32[2,8,256], index: 3, kind: output, shape index: {}]  }
   0x1   :  { %10 = vsyncpa [#allocation5 + $0x1], 0  ;;  %s876_s12 = smov 0   ;;  %s878_s13 = smov 0  }
   0x2   :  { %s880_s14 = smov 0   ;;  %s882_s15 = smov 0  }
   0x3   :  { %s884_s16 = smov 0   ;;  %s886_s17 = smov 0  }
   0x4 LB: > { %s625_s18 = sadd.s32 4294967295, %s831_s17   ;;  %s626_s19 = sadd.s32 4294967294, %s831_s17   ;;  %s831_s17 = sphi %s886_s17, %s16_s17   ;;  %s827_s16 = sphi %s884_s16, %s1125_s16   ;;  %s823_s15 = sphi %s882_s15, %s1124_s15   ;;  %s819_s14 = sphi %s880_s14, %s1123_s14   ;;  %s815_s13 = sphi %s878_s13, %s1122_s13   ;;  %s811_s12 = sphi %s876_s12, %s1121_s12  }
   0x5   : > { %s28_s20 = sadd.s32 1, %s827_s16  ;;  %s79_s21 = sadd.s32 1, %s819_s14 }
   0x6   : > { %p30_p0 = scmp.ge.s32.totalorder %s28_s20, 2  ;;  %p89_p1 = scmp.ne.s32.totalorder %s819_s14, %s815_s13 }
   0x7   : > { %p90_p2 = scmp.eq.s32.totalorder %s625_s18, 1  ;;  %p95_p3 = scmp.ne.s32.totalorder %s815_s13, %s811_s12 }
   0x8   : > { %s1127_s20 = smov (%p30_p0, %s28_s20), 0  ;;  %p96_p5 = scmp.eq.s32.totalorder %s626_s19, 1 }
   0x9   : > { %p916_p4 = por %p90_p2, %p89_p1  ;;  %s74_s23 = ssub.s32 %s827_s16, %s1127_s20 }
   0xa   : > { %p628_p6 = scmp.ge.s32.totalorder %s831_s17, 1  ;;  %p77_p7 = scmp.eq.s32.totalorder %s74_s23, 0 }
   0xb   : > { %p923_p8 = por %p96_p5, %p95_p3  ;;  %p120_p9 = scmp.lt.s32.totalorder %s831_s17, 3 }
   0xc   : > { %s929_s25 = scalar_select %p77_p7, %s819_s14, %s79_s21  }
   0xd   : > { %p121_p10 = pnand %p628_p6, %p120_p9 }
   0xe   : > { %s134_s26 = sand.u32 (!%p121_p10), 1, %s815_s13   ;;  %s638_s27 = sshll.u32 (!%p121_p10), %s823_s15, 7 }
   0xf   : > { %124 = sbr.rel (%p121_p10) target bundleno = 363 (0x16b), region = 28  ;;  %s629_s28 = sshll.u32 (!%p121_p10), %s134_s26, 4 }
  0x10   : > { %s144_s4 = scalar_lea.hbm (!%p121_p10), %s1107_s0, %s638_s27  ;;  %s833_s5 = smov (!%p121_p10), [#allocation2 + $0x4]  }
  0x11   : > { %s153_s6 = sshll.u32 (!%p121_p10), %s833_s5, 4  ;;  %s731_s7 = scalar_lea.hbm (!%p121_p10), %s144_s4, 128  ;;  %s154_s6 = int_to_ptr.vmem [resolvable:$true] %s153_s6 }
  0x12   : > { %p732_p11 = scmp.ne.s32.totalorder (!%p121_p10), %s144_s4, %s731_s7  ;;  %s733_s10 = scalar_lea.hbm (!%p121_p10), %s1107_s0, 256 }
  0x13   : > { %p734_p12 = scmp.lt.s32.totalorder (!%p121_p10), %s144_s4, %s1107_s0  ;;  %p735_p13 = scmp.lt.s32.totalorder (!%p121_p10), %s733_s10, %s731_s7 }
  0x15   : > { %p736_p0 = por %p735_p13, %p734_p12 }
  0x17   : > { %p737_p1 = pnand %p736_p0, %p732_p11 }
  0x19   : > { %740 = shalt.err (!%p737_p1)  }
  0x1a   : > { %s741_s19 = scalar_lea.vmem %s154_s6, 128  ;;  %s834_s21 = smov [#allocation2]  }
  0x1b   : > { %p742_p2 = scmp.ne.s32.totalorder %s154_s6, %s741_s19  ;;  %s743_s23 = sshll.u32 %s834_s21, 4  ;;  %s744_s23 = int_to_ptr.vmem [resolvable:$false] %s743_s23 }
  0x1c   : > { %s745_s27 = scalar_lea.vmem %s744_s23, 256  ;;  %p746_p3 = scmp.lt.s32.totalorder %s154_s6, %s744_s23 }
  0x1d   : > { %p747_p5 = scmp.lt.s32.totalorder %s745_s27, %s741_s19 }
  0x1f   : > { %p748_p6 = por %p747_p5, %p746_p3 }
  0x21   : > { %p749_p7 = pnand %p748_p6, %p742_p2 }
  0x23   : > { %752 = shalt.err (!%p749_p7)  }
  0x24   : > { %156 = dma.hbm_to_vmem [thread:$0]  %s144_s4, 128, %s154_s6, [#allocation3] }
  0x25   : > { %s944_s29 = scalar_lea.vmem [#allocation4], %s629_s28 }
  0x26   : > { %803 = dma.done.wait [#allocation3], 128 }
  0x27   : > { %804 = vsyncadd [#allocation3], 4294967168  ;;  %v835_v0 = vmov 4   ;;  %v836_v1 = vmov 6   ;;  %v320_v2 = vld [vmem:[%s1108_s1] sm:$0xf]  ;;  %v183_v29 = vlaneseq }
  0x28   : > { %716 = vset.pattern.permute.xlu1 %v835_v0  ;;  %720 = vset.pattern.permute.xlu0 %v836_v1  ;;  %v161_v3 = vld [vmem:[#allocation2 + $0x4] sm:$0xff]  ;;  %s837_s7 = smov 16   ;;  %v353_v5 = vld [vmem:[%s1108_s1] sm:$0xf]  ;;  %v838_v6 = vmov 7   ;;  %v839_v9 = vmov 3  }
  0x29   : > { %323 = vperm.xlu1 %716, %v320_v2   ;;  %164 = vrot.lane.b32.xlu0 %v161_v3, %s837_s7  ;;  %v163_v4 = vcombine.high %v161_v3, %v161_v3  ;;  %v262_v7 = vld [vmem:[%s1108_s1] sm:$0xf]  ;;  %v840_v11 = vmov 8   ;;  %v841_v12 = vmov 1   ;;  %v842_v15 = vmov 0   ;;  %s848_s8 = smov 113  }
  0x2a   : > { %v290_v8 = vld [vmem:[%s1108_s1] sm:$0xf]  ;;  %v843_v16 = vmov 2   ;;  %v844_v18 = vmov 5   ;;  %vm168_vm0 = vcmask 130048   ;;  %v845_v21 = vmov 0.0  }
  0x2b   : > { %v464_v10 = vld [vmem:[%s1108_s1] sm:$0xf]  ;;  %v847_v30 = vmov 839922192   ;;  %v974_v36 = vshrl.u32 %v183_v29, 7  ;;  %s849_s9 = smov 97  }
  0x2c   : > { %v234_v13 = vld [vmem:[%s1108_s1] sm:$0xf]  ;;  %v305_v31 = vunpack.c.l.s4 %v847_v30  ;;  %s850_s28 = smov 111   ;;  %s851_s4 = smov 95   ;;  %vm227_vm1 = vcmask 7168   ;;  %vm255_vm4 = vcmask 924672  }
  0x2d   : > { %717 = vset.pattern.permute.xlu1 %v838_v6  ;;  %166 = vrot.lane.b32.xlu0 %v163_v4, %s837_s7  ;;  %v408_v14 = vld [vmem:[%s1108_s1] sm:$0xf]  ;;  %s846_s7 = smov 1   ;;  %s852_s6 = smov 127   ;;  %vm283_vm5 = vcmask 793600   ;;  %vm401_vm6 = vcmask 1039360  }
  0x2e   : > { %356 = vperm.xlu1 %717, %v353_v5   ;;  %v436_v17 = vld [vmem:[%s1108_s1] sm:$0xf]  ;;  %v306_v35 = vunpack.c.0.s8 %v305_v31  ;;  %s853_s10 = smov 96   ;;  %s854_s11 = smov 112   ;;  %vm344_vm7 = vcmask 916480   ;;  %vm429_vm9 = vcmask 908288  }
  0x2f   : > { %v474_v58 = vld [vmem:[%s1109_s2] sm:$0xff]  ;;  %vm457_vm11 = vcmask 777216   ;;  %vm377_vm12 = vcmask 785408   ;;  %s639_s21 = sshll.u32 %s823_s15, 8  ;;  %s559_s23 = sshll.u32 %s944_s29, 4  ;;  %s560_s23 = int_to_ptr.vmem [resolvable:$true] %s559_s23 }
  0x30   : > { %v309_v39 = vsub.s32 %v306_v35, %v974_v36  ;;  %s1063_s5 = scalar_lea.hbm %s1110_s3, %s639_s21  ;;  %s855_s15 = smov [#allocation4]  }
  0x31   : > { %293 = vperm.xlu0 %720, %v290_v8  }
  0x32   : > { %718 = vset.pattern.permute.xlu1 %v839_v9 }
  0x33   : > { %265 = vperm.xlu1 %718, %v262_v7  }
  0x35   : > { %723 = vset.pattern.permute.xlu0 %v840_v11 }
  0x36   : > { %467 = vperm.xlu0 %723, %v464_v10  }
  0x37   : > { %719 = vset.pattern.permute.xlu1 %v841_v12 }
  0x38   : > { %302 = vperm.xlu1 %719, %v290_v8  }
  0x3a   : > { %724 = vset.pattern.permute.xlu0 %v842_v15 }
  0x3b   : > { %237 = vperm.xlu0 %724, %v234_v13  }
  0x3c   : > { %721 = vset.pattern.permute.xlu1 %v843_v16 }
  0x3d   : > { %411 = vperm.xlu1 %721, %v408_v14  }
  0x41   : > { %722 = vset.pattern.permute.xlu1 %v844_v18 }
  0x42   : > { %439 = vperm.xlu1 %722, %v436_v17  }
  0x46   : > { %725 = vset.pattern.permute.xlu1 %v841_v12 }
  0x9b   : > { %v165_v19 = vpop.permute.xlu0 %164 }
  0x9c   : > { %v172_v20 = vsel %vm168_vm0, 0.0, %v165_v19 }
  0x9d   : > { %v177_v22 = vcombine.low %v845_v21, %v172_v20  ;;  %v730_v27 = vcombine.low %v172_v20, %v172_v20 }
  0x9f   : > { %181 = vst [vmem:[#allocation2] sm:$0xff] %v177_v22  ;;  %v167_v23 = vpop.permute.xlu0 %166  ;;  %221 = vrot.lane.b32.xlu1 %v177_v22, %s846_s7 }
  0xa0   : > { %v169_v24 = vsel %vm168_vm0, %v165_v19, %v167_v23  ;;  %v173_v25 = vsel %vm168_vm0, %v167_v23, 0.0 }
  0xa1   : > { %v178_v26 = vcombine.low %v169_v24, %v173_v25 }
  0xa3   : > { %182 = vst [vmem:[#allocation2 + $0x8] sm:$0xff] %v178_v26  ;;  %223 = vrot.lane.b32.xlu1 %v730_v27, %s846_s7 }
  0xa4   : > { %v324_v28 = vpop.permute.xlu1 %323 }
  0xa5   : > { %v331_v49 = vrot.slane %v324_v28, %v309_v39 }
  0xa9   : > { %v357_v33 = vpop.permute.xlu1 %356 }
  0xaa   : > { %v318_v32 = vld [vmem:[#allocation2 + $0x4] sm:$0xff]  ;;  %v245_v38 = vld [vmem:[#allocation2 + $0xc] sm:$0xf]  ;;  %v364_v46 = vrot.slane %v357_v33, %v309_v39 }
  0xab   : > { %v213_v34 = vld [vmem:[#allocation2 + $0x8] sm:$0xf]  ;;  %249 = vrot.lane.b32.xlu1 %v318_v32, %s848_s8  ;;  %v273_v41 = vld [vmem:[#allocation2 + $0xc] sm:$0xf]  ;;  %v248_v44 = vcombine.high %v318_v32, %v318_v32  ;;  %v333_v52 = vmul.f32 %v331_v49, %v318_v32 }
  0xac   : > { %225 = vrot.lane.b32.xlu0 %v213_v34, %s846_s7  ;;  %v387_v45 = vld [vmem:[#allocation2 + $0xc] sm:$0xf]  ;;  %v366_v48 = vmul.f32 %v364_v46, %v318_v32  ;;  %v294_v61 = vpop.permute.xlu0 %293  ;;  %s543_s7 = scalar_lea.sflag [#allocation5], %s134_s26 }
  0xad   : > { %v419_v47 = vld [vmem:[#allocation2 + $0xc] sm:$0xf]  ;;  %v337_v55 = vcombine.high %v333_v52, %v333_v52 }
  0xae   : > { %v976_v37 = vpop.permute.xlu1 %265  ;;  %v352_v50 = vld [vmem:[#allocation2 + $0xc] sm:$0xf]  ;;  %v370_v56 = vcombine.high %v366_v48, %v366_v48 }
  0xaf   : > { %253 = vrot.lane.b32.xlu1 %v245_v38, %s848_s8  ;;  %v367_v51 = vmul.f32 %v364_v46, %v352_v50  ;;  %v319_v53 = vld [vmem:[#allocation2 + $0xc] sm:$0xf] }
  0xb0   : > { %277 = vrot.lane.b32.xlu0 %v318_v32, %s849_s9  ;;  %v334_v54 = vmul.f32 %v331_v49, %v319_v53  ;;  %v447_v57 = vld [vmem:[#allocation2 + $0xc] sm:$0xf] }
  0xb1   : > { %v995_v63 = vpop.permute.xlu0 %467 }
  0xb3   : > { %v303_v40 = vpop.permute.xlu1 %302  ;;  %423 = vrot.lane.b32.xlu1 %v318_v32, %s850_s28 }
  0xb4   : > { %v310_v42 = vrot.slane %v303_v40, %v309_v39  ;;  %281 = vrot.lane.b32.xlu0 %v273_v41, %s849_s9 }
  0xb6   : > { %v980_v43 = vmul.f32 %v318_v32, %v310_v42  ;;  %v238_v1 = vpop.permute.xlu0 %237 }
  0xb7   : > { %451 = vrot.lane.b32.xlu1 %v318_v32, %s851_s4 }
  0xb8   : > { %395 = vrot.lane.b32.xlu0 %v318_v32, %s852_s6  ;;  %v991_v59 = vpop.permute.xlu1 %411 }
  0xbb   : > { %279 = vrot.lane.b32.xlu1 %v248_v44, %s849_s9  ;;  %s757_s9 = sshll.u32 %s855_s15, 4  ;;  %s758_s9 = int_to_ptr.vmem [resolvable:$false] %s757_s9 }
  0xbc   : > { %399 = vrot.lane.b32.xlu0 %v387_v45, %s852_s6  ;;  %p760_p12 = scmp.lt.s32.totalorder %s560_s23, %s758_s9 }
  0xbd   : > { %v993_v60 = vpop.permute.xlu1 %439 }
  0xbf   : > { %397 = vrot.lane.b32.xlu1 %v248_v44, %s852_s6 }
  0xc0   : > { %427 = vrot.lane.b32.xlu0 %v419_v47, %s850_s28 }
  0xc3   : > { %371 = vrot.lane.b32.xlu1 %v366_v48, %s853_s10 }
  0xc4   : > { %251 = vrot.lane.b32.xlu0 %v248_v44, %s848_s8  ;;  %s753_s8 = scalar_lea.vmem %s560_s23, 256 }
  0xc5   : > { %p754_p9 = scmp.ne.s32.totalorder %s560_s23, %s753_s8 }
  0xc7   : > { %375 = vrot.lane.b32.xlu1 %v367_v51, %s853_s10  ;;  %p755_p10 = pnand %p754_p9, %p916_p4 }
  0xc8   : > { %338 = vrot.lane.b32.xlu0 %v333_v52, %s854_s11  ;;  %v314_v52 = vcombine.high %v980_v43, %v980_v43 }
  0xc9   : > { %p756_p11 = pneg %p755_p10 }
  0xcb   : > { %425 = vrot.lane.b32.xlu1 %v248_v44, %s850_s28  ;;  %s759_s28 = scalar_lea.vmem %s758_s9, 512 }
  0xcc   : > { %342 = vrot.lane.b32.xlu0 %v334_v54, %s854_s11  ;;  %p761_p13 = scmp.lt.s32.totalorder %s759_s28, %s753_s8 }
  0xce   : > { %p762_p0 = por %p761_p13, %p760_p12 }
  0xcf   : > { %340 = vrot.lane.b32.xlu1 %v337_v55, %s854_s11 }
  0xd0   : > { %453 = vrot.lane.b32.xlu0 %v248_v44, %s851_s4  ;;  %p763_p1 = pnand %p762_p0, %p756_p11 }
  0xd3   : > { %455 = vrot.lane.b32.xlu1 %v447_v57, %s851_s4 }
  0xd4   : > { %373 = vrot.lane.b32.xlu0 %v370_v56, %s853_s10 }
  0xd7   : > { %493 = vperm.xlu1 %725, %v474_v58  }
  0xd8   : > { %477 = vperm.xlu0 %724, %v474_v58  }
  0xdb   : > { %726 = vset.pattern.permute.xlu1 %v843_v16 }
  0xdc   : > { %727 = vset.pattern.permute.xlu0 %v839_v9  ;;  %509 = vperm.xlu1 %726, %v474_v58   ;;  %v184_v9 = vand.u32 127, %v183_v29 }
  0xdd   : > { %525 = vperm.xlu0 %727, %v474_v58  }
  0xde   : > { %v185_v11 = vadd.s32 128, %v184_v9  ;;  %v190_v14 = vand.u32 15, %v184_v9 }
  0xe0   : > { %v197_v15 = vand.u32 15, %v185_v11  ;;  %vm1000_vm2 = vcmp.ge.s32.totalorder %v190_v14, 1  ;;  %vm1022_vm8 = vcmp.lt.s32.totalorder %v190_v14, 15 }
  0xe2   : > { %vm1004_vm3 = vcmp.ge.s32.totalorder %v197_v15, 1  ;;  %vm1028_vm10 = vcmp.lt.s32.totalorder %v197_v15, 15 }
 0x111   : > { %v222_v62 = vpop.permute.xlu1 %221 }
 0x115   : > { %v224_v0 = vpop.permute.xlu1 %223 }
 0x116   : > { %v228_v19 = vsel %vm227_vm1, %v222_v62, %v224_v0 }
 0x117   : > { %v232_v24 = vsel %vm1000_vm2, %v228_v19, 0.0 }
 0x118   : > { %v240_v35 = vmul.f32 %v238_v1, %v232_v24 }
 0x11d   : > { %v250_v2 = vpop.permute.xlu1 %249 }
 0x11e   : > { %v226_v3 = vpop.permute.xlu0 %225 }
 0x11f   : > { %v229_v21 = vsel %vm227_vm1, %v224_v0, %v226_v3 }
 0x120   : > { %v233_v25 = vsel %vm1004_vm3, %v229_v21, 0.0 }
 0x121   : > { %v254_v4 = vpop.permute.xlu1 %253  ;;  %v241_v38 = vmul.f32 %v238_v1, %v233_v25 }
 0x122   : > { %v278_v5 = vpop.permute.xlu0 %277 }
 0x125   : > { %v424_v6 = vpop.permute.xlu1 %423 }
 0x126   : > { %v282_v7 = vpop.permute.xlu0 %281 }
 0x129   : > { %v997_v8 = vpop.permute.xlu1 %451 }
 0x12a   : > { %v396_v10 = vpop.permute.xlu0 %395 }
 0x12d   : > { %v280_v12 = vpop.permute.xlu1 %279 }
 0x12e   : > { %v400_v13 = vpop.permute.xlu0 %399  ;;  %v284_v28 = vsel %vm283_vm5, %v278_v5, %v280_v12  ;;  %v285_v29 = vsel %vm283_vm5, %v280_v12, %v282_v7 }
 0x12f   : > { %v288_v40 = vsel %vm1000_vm2, %v284_v28, 0.0  ;;  %v289_v41 = vsel %vm1004_vm3, %v285_v29, 0.0  ;;  %v482_v28 = vsub.s32 0, %v974_v36  ;;  %v498_v29 = vsub.s32 1, %v974_v36 }
 0x130   : > { %v296_v46 = vmul.f32 %v294_v61, %v288_v40  ;;  %v297_v47 = vmul.f32 %v294_v61, %v289_v41 }
 0x131   : > { %v398_v16 = vpop.permute.xlu1 %397 }
 0x132   : > { %v428_v17 = vpop.permute.xlu0 %427  ;;  %v402_v54 = vsel %vm401_vm6, %v396_v10, %v398_v16  ;;  %v403_v55 = vsel %vm401_vm6, %v398_v16, %v400_v13 }
 0x133   : > { %v407_v3 = vsel %vm1028_vm10, %v403_v55, 0.0 }
 0x134   : > { %v415_v15 = vmul.f32 %v991_v59, %v407_v3 }
 0x135   : > { %v372_v22 = vpop.permute.xlu1 %371 }
 0x136   : > { %v252_v23 = vpop.permute.xlu0 %251 }
 0x137   : > { %v256_v26 = vsel %vm255_vm4, %v250_v2, %v252_v23  ;;  %v257_v27 = vsel %vm255_vm4, %v252_v23, %v254_v4  ;;  %v406_v2 = vsel %vm1022_vm8, %v402_v54, 0.0 }
 0x138   : > { %v260_v30 = vsel %vm1000_vm2, %v256_v26, 0.0  ;;  %v261_v31 = vsel %vm1004_vm3, %v257_v27, 0.0  ;;  %v414_v14 = vmul.f32 %v991_v59, %v406_v2 }
 0x139   : > { %v268_v32 = vmul.f32 %v976_v37, %v260_v30  ;;  %v269_v33 = vmul.f32 %v976_v37, %v261_v31  ;;  %v376_v34 = vpop.permute.xlu1 %375  ;;  %v514_v30 = vsub.s32 2, %v974_v36 }
 0x13a   : > { %v339_v39 = vpop.permute.xlu0 %338 }
 0x13b   : > { %v270_v42 = vadd.f32 %v268_v32, %v240_v35  ;;  %v271_v44 = vadd.f32 %v269_v33, %v241_v38  ;;  %v530_v38 = vsub.s32 3, %v974_v36 }
 0x13d   : > { %v426_v45 = vpop.permute.xlu1 %425  ;;  %v298_v49 = vadd.f32 %v296_v46, %v270_v42  ;;  %v299_v37 = vadd.f32 %v297_v47, %v271_v44 }
 0x13e   : > { %v343_v48 = vpop.permute.xlu0 %342  ;;  %v430_v61 = vsel %vm429_vm9, %v424_v6, %v426_v45  ;;  %v431_v62 = vsel %vm429_vm9, %v426_v45, %v428_v17 }
 0x13f   : > { %v316_v0 = vadd.f32 %v980_v43, %v298_v49  ;;  %v317_v1 = vadd.f32 %v314_v52, %v299_v37  ;;  %v434_v6 = vsel %vm1022_vm8, %v430_v61, 0.0  ;;  %v435_v43 = vsel %vm1028_vm10, %v431_v62, 0.0 }
 0x140   : > { %v442_v19 = vmul.f32 %v993_v60, %v434_v6  ;;  %v443_v20 = vmul.f32 %v993_v60, %v435_v43 }
 0x141   : > { %v341_v51 = vpop.permute.xlu1 %340 }
 0x142   : > { %v454_v56 = vpop.permute.xlu0 %453  ;;  %v345_v57 = vsel %vm344_vm7, %v339_v39, %v341_v51  ;;  %v346_v58 = vsel %vm344_vm7, %v341_v51, %v343_v48 }
 0x143   : > { %v458_v5 = vsel %vm457_vm11, %v997_v8, %v454_v56  ;;  %v349_v7 = vadd.f32 %v345_v57, %v316_v0  ;;  %v350_v9 = vadd.f32 %v346_v58, %v317_v1 }
 0x144   : > { %v462_v17 = vsel %vm1022_vm8, %v458_v5, 0.0 }
 0x145   : > { %v456_v4 = vpop.permute.xlu1 %455  ;;  %v470_v23 = vmul.f32 %v995_v63, %v462_v17 }
 0x146   : > { %v374_v10 = vpop.permute.xlu0 %373  ;;  %v459_v11 = vsel %vm457_vm11, %v454_v56, %v456_v4 }
 0x147   : > { %v378_v12 = vsel %vm377_vm12, %v372_v22, %v374_v10  ;;  %v379_v13 = vsel %vm377_vm12, %v374_v10, %v376_v34  ;;  %v463_v18 = vsel %vm1028_vm10, %v459_v11, 0.0 }
 0x148   : > { %v382_v16 = vadd.f32 %v378_v12, %v349_v7  ;;  %v383_v8 = vadd.f32 %v379_v13, %v350_v9  ;;  %v471_v59 = vmul.f32 %v995_v63, %v463_v18 }
 0x14a   : > { %v416_v21 = vadd.f32 %v414_v14, %v382_v16  ;;  %v417_v22 = vadd.f32 %v415_v15, %v383_v8 }
 0x14c   : > { %v444_v24 = vadd.f32 %v442_v19, %v416_v21  ;;  %v445_v25 = vadd.f32 %v443_v20, %v417_v22 }
 0x14e   : > { %v472_v26 = vadd.f32 %v470_v23, %v444_v24  ;;  %v473_v27 = vadd.f32 %v471_v59, %v445_v25 }
 0x150   : > { %v483_v31 = vrot.slane %v472_v26, %v482_v28  ;;  %v487_v32 = vrot.slane %v473_v27, %v482_v28  ;;  %v499_v60 = vrot.slane %v472_v26, %v498_v29  ;;  %v503_v34 = vrot.slane %v473_v27, %v498_v29 }
 0x151   : > { %v515_v42 = vrot.slane %v472_v26, %v514_v30  ;;  %v519_v44 = vrot.slane %v473_v27, %v514_v30  ;;  %v531_v45 = vrot.slane %v472_v26, %v530_v38  ;;  %v535_v46 = vrot.slane %v473_v27, %v530_v38 }
 0x152   : > { %v494_v33 = vpop.permute.xlu1 %493 }
 0x153   : > { %v478_v35 = vpop.permute.xlu0 %477  ;;  %v504_v40 = vmul.f32 %v499_v60, %v494_v33  ;;  %v505_v41 = vmul.f32 %v503_v34, %v494_v33 }
 0x154   : > { %v488_v39 = vmul.f32 %v483_v31, %v478_v35  ;;  %v489_v63 = vmul.f32 %v487_v32, %v478_v35 }
 0x156   : > { %v506_v48 = vadd.f32 %v504_v40, %v488_v39  ;;  %v507_v49 = vadd.f32 %v505_v41, %v489_v63 }
 0x157   : > { %v510_v47 = vpop.permute.xlu1 %509 }
 0x158   : > { %v526_v37 = vpop.permute.xlu0 %525  ;;  %v520_v50 = vmul.f32 %v515_v42, %v510_v47  ;;  %v521_v51 = vmul.f32 %v519_v44, %v510_v47 }
 0x159   : > { %v536_v36 = vmul.f32 %v531_v45, %v526_v37  ;;  %v537_v52 = vmul.f32 %v535_v46, %v526_v37 }
 0x15a   : > { %v522_v53 = vadd.f32 %v520_v50, %v506_v48  ;;  %v523_v54 = vadd.f32 %v521_v51, %v507_v49 }
 0x15c   : > { %v538_v55 = vadd.f32 %v536_v36, %v522_v53  ;;  %v539_v56 = vadd.f32 %v537_v52, %v523_v54 }
 0x15e   : > { %540 = vst [vmem:[%s944_s29] sm:$0xff] %v538_v55  ;;  %541 = vst [vmem:[%s944_s29 + $0x8] sm:$0xff] %v539_v56 }
 0x15f   : > { %766 = shalt.err (!%p763_p1)
}
 0x160   : > { %s767_s29 = scalar_lea.hbm %s1063_s5, 256  ;;  %s771_s6 = scalar_lea.hbm %s1110_s3, 512 }
 0x161   : > { %p768_p2 = scmp.ne.s32.totalorder %s1063_s5, %s767_s29  ;;  %p772_p6 = scmp.lt.s32.totalorder %s1063_s5, %s1110_s3 }
 0x162   : > { %p773_p7 = scmp.lt.s32.totalorder %s771_s6, %s767_s29 }
 0x163   : > { %p769_p3 = pnand %p768_p2, %p916_p4 }
 0x164   : > { %p774_p9 = por %p773_p7, %p772_p6 }
 0x165   : > { %p770_p5 = pneg %p769_p3 }
 0x167   : > { %p775_p10 = pnand %p774_p9, %p770_p5 }
 0x169   : > { %778 = shalt.err (!%p775_p10)
}
 0x16a   : > { %640 = dma.vmem_to_hbm [thread:$0]  (%p916_p4), %s560_s23, 256, %s1063_s5, %s543_s7  }
 0x16b PF: > { %p646_p11 = scmp.ge.s32.totalorder %s831_s17, 2  ;;  %s571_s18 = sand.u32 1, %s811_s12  }
 0x16c   : > { %s572_s19 = scalar_lea.sflag [#allocation5], %s571_s18 }
 0x16d   : > { %p643_p12 = pnand %p646_p11, %p923_p8 }
 0x16f   : > { %p644_p13 = pneg %p643_p12 }
 0x171   : > { %806 = dma.done.wait (%p644_p13), %s572_s19, 256  }
 0x172   : > { %808 = vsyncadd (%p644_p13), %s572_s19, 4294967040  ;;  %s16_s17 = sadd.s32 1, %s831_s17   ;;  %s1121_s12 = smov %s815_s13 }
 0x173   : > { %p13_p0 = scmp.ge.s32.totalorder %s16_s17, 4   ;;  %s1122_s13 = smov %s819_s14 }
 0x174   : > { %s1123_s14 = smov %s929_s25  ;;  %s1124_s15 = smov %s827_s16 }
 0x175   : > { %s1125_s16 = smov %s1127_s20  ;;  %15 = sbr.rel (!%p13_p0) target bundleno = 4 (0x4), region = 70 }
 0x17a   :  { %577 = vsyncpa [#allocation5], 1 }
 0x17b   :  { %579 = vsyncpa [#allocation5 + $0x1], 1 }
 0x17c   :  { %580 = vsyncmov [#allocation3] }
 0x17f   :  { %s581_s22 = vpop.sfrf %580 }
 0x180   :  { %p637_p4 = scmp.ne.s32.totalorder %s581_s22, 0 }
 0x182   :  { %585 = shalt.err (%p637_p4)  }

</bundles_post_ra>
